<compile_context>
chip_gen: v7x
topology: tpu7x:2x2x1
jax: 0.10.0
libtpu: 0.0.40
codegen_flags: <defaults>
</compile_context>

<pallas_src>
import functools

import jax
import jax.numpy as jnp
from jax.experimental import pallas as pl
from jax.experimental.pallas import tpu as pltpu


_DEFAULT_MAX_BLOCK_BYTES = 4 * 1024 * 1024  # per-input block cap (double-buffered)


def _dice_partial_kernel(w_ref, x_ref, t_ref, out_ref, inter_acc, sum_acc,
                         *, needs_mask, tail_valid):
    # w_ref:     (BR, 1)       f32      per-row weights (w[c] replicated over n)
    # x_ref:     (BR, tile_hw) any      input rows (flattened (n, c) on sublanes)
    # t_ref:     (BR, tile_hw) any      target rows
    # out_ref:   (1, 1, 1)     f32      partial weighted loss for this row block
    # inter_acc: (BR, 1)       f32      running sum of x*t over HW
    # sum_acc:   (BR, 1)       f32      running sum of x+t over HW
    hw = pl.program_id(1)
    last = pl.num_programs(1) - 1

    @pl.when(hw == 0)
    def _init():
        inter_acc[...] = jnp.zeros_like(inter_acc)
        sum_acc[...] = jnp.zeros_like(sum_acc)

    def _load():
        # In-register upcast: inputs stream from HBM in their native dtype.
        return x_ref[...].astype(jnp.float32), t_ref[...].astype(jnp.float32)

    def _accumulate(x, t):
        inter_acc[...] += jnp.sum(x * t, axis=1, keepdims=True)
        sum_acc[...] += jnp.sum(x + t, axis=1, keepdims=True)

    def _finalize():
        smooth = 1.0
        dice = 2.0 * (inter_acc[...] + smooth) / (sum_acc[...] + smooth)  # (BR, 1)
        # totalLoss = sum_c w_c * (1 - mean_n dice_{n,c})
        #           = (1/N) * sum_{rows} w_row * (1 - dice_row); the /N and the sum
        # over row blocks happen in the wrapper.
        partial = jnp.sum(w_ref[...] * (1.0 - dice))
        out_ref[...] = jnp.reshape(partial, (1, 1, 1)).astype(out_ref.dtype)

    if needs_mask:
        # Only the final HW step is ragged: keep the iota/compare/select path out of
        # the steady-state loop so the hot loop stays cast+mul+add+reduce only.
        @pl.when(hw < last)
        def _steady():
            x, t = _load()
            _accumulate(x, t)

        @pl.when(hw == last)
        def _tail_and_finalize():
            x, t = _load()
            lane = jax.lax.broadcasted_iota(jnp.int32, x.shape, 1)
            keep = lane < tail_valid
            # Mask BEFORE any arithmetic: lanes past the logical extent read
            # unspecified (possibly NaN/Inf) pipeline-buffer data.
            x = jnp.where(keep, x, 0.0)
            t = jnp.where(keep, t, 0.0)
            _accumulate(x, t)
            _finalize()
    else:
        x, t = _load()
        _accumulate(x, t)

        @pl.when(hw == last)
        def _done():
            _finalize()


def _pick_row_block(nc, sublane):
    """Row-block size BR.

    BR is always a divisor of nc (no padded/garbage rows, so no NaN-masking is
    needed before the dice divide).  When nc allows it, BR is capped at nc // 2 so
    the 'parallel' row axis has >= 2 blocks and v7x megacore can split the work
    across both TensorCores.  Capped at 64 rows.
    """
    if nc % sublane != 0:
        return nc  # full array dim is always a legal block size (R == 1)
    if nc >= 2 * sublane:
        limit = min(nc // 2, 64)
    else:
        limit = min(nc, 64)
    best = sublane
    b = sublane
    while b <= limit:
        if nc % b == 0:
            best = b
        b += sublane
    return best


def _pick_hw_tile(hw, row_block, itemsize, max_block_bytes):
    """Lane-dense HW tile, capped so each input block is <= max_block_bytes."""
    max_lanes = max(128, (max_block_bytes // (itemsize * row_block)) // 128 * 128)
    if hw <= max_lanes:
        return hw, False                 # single full-extent block, no mask needed
    t = max_lanes
    while t >= 128:
        if hw % t == 0:
            return t, False              # exact tiling
        t -= 128
    return max_lanes, True               # ragged tail -> mask on last step only


def multiclass_dice_loss(inputs, target, weights=None,
                         max_block_bytes=_DEFAULT_MAX_BLOCK_BYTES):
    """inputs/target: (N, C, H, W); weights: optional (C,). Matches the PyTorch module."""
    N, C, H, W = inputs.shape
    assert target.shape == inputs.shape
    NC, HW = N * C, H * W

    def _prep(a):
        # TPU has no f64 vector path and i1 has no clean vreg format; everything
        # else (f32/bf16/f16/int) streams natively and is upcast to f32 in-register
        # inside the kernel -- no extra HBM pass for a wrapper-side cast.
        if a.dtype in (jnp.float64, jnp.bool_):
            a = a.astype(jnp.float32)
        return a

    x2 = _prep(inputs).reshape(NC, HW)   # free reshape, no HBM transpose
    t2 = _prep(target).reshape(NC, HW)

    if weights is None:
        w = jnp.ones((C,), dtype=jnp.float32)   # weights=None <=> multiply by 1
    else:
        w = jnp.asarray(weights, dtype=jnp.float32)
    w_rows = jnp.broadcast_to(w[None, :], (N, C)).reshape(NC, 1)   # row n*C+c -> w[c]

    itemsize_x = x2.dtype.itemsize
    itemsize_t = t2.dtype.itemsize
    min_item = min(itemsize_x, itemsize_t)
    max_item = max(itemsize_x, itemsize_t)
    # Narrower dtypes pack more rows per sublane tile.
    sublane = 8 if min_item >= 4 else (16 if min_item == 2 else 32)

    BR = _pick_row_block(NC, sublane)
    tile_hw, needs_mask = _pick_hw_tile(HW, BR, max_item, max_block_bytes)

    R = NC // BR
    num_hw = pl.cdiv(HW, tile_hw)
    tail_valid = HW - (num_hw - 1) * tile_hw   # lanes valid in the final HW block

    kernel = functools.partial(
        _dice_partial_kernel, needs_mask=needs_mask, tail_valid=tail_valid)

    partials = pl.pallas_call(
        kernel,
        out_shape=jax.ShapeDtypeStruct((R, 1, 1), jnp.float32),
        grid_spec=pltpu.PrefetchScalarGridSpec(
            num_scalar_prefetch=0,
            grid=(R, num_hw),
            in_specs=[
                pl.BlockSpec((BR, 1), lambda r, h: (r, 0)),         # per-row weights
                pl.BlockSpec((BR, tile_hw), lambda r, h: (r, h)),   # input rows
                pl.BlockSpec((BR, tile_hw), lambda r, h: (r, h)),   # target rows
            ],
            out_specs=pl.BlockSpec((1, 1, 1), lambda r, h: (r, 0, 0)),
            scratch_shapes=[
                pltpu.VMEM((BR, 1), jnp.float32),   # sum(x*t) partials
                pltpu.VMEM((BR, 1), jnp.float32),   # sum(x+t) partials
            ],
        ),
        compiler_params=pltpu.CompilerParams(
            dimension_semantics=("parallel", "arbitrary"),   # rows parallel, HW reduce
            vmem_limit_bytes=32 * 1024 * 1024,               # covers v5e's 16 MiB default
        ),
    )(w_rows, x2, t2)

    # totalLoss = (1/N) * sum over all (n, c) rows of w[c] * (1 - dice_{n,c})
    return jnp.sum(partials) / N


def _reference(inputs, target, weights=None):
    # Pure-JAX reproduction of the PyTorch forward (per-class DiceLoss, summed).
    N, C = inputs.shape[0], inputs.shape[1]
    inputs = inputs.astype(jnp.float32)
    target = target.astype(jnp.float32)
    total = 0.0
    for i in range(C):
        xf = inputs[:, i].reshape(N, -1)
        tf = target[:, i].reshape(N, -1)
        inter = jnp.sum(xf * tf, axis=1)
        loss = 2.0 * (inter + 1.0) / (jnp.sum(xf, axis=1) + jnp.sum(tf, axis=1) + 1.0)
        loss = 1.0 - jnp.sum(loss) / N
        if weights is not None:
            loss = loss * weights[i]
        total = total + loss
    return total


if __name__ == "__main__":
    key = jax.random.PRNGKey(0)
    k1, k2, k3, k4, k5 = jax.random.split(key, 5)

    # --- Test 1: small f32, no weights (single HW block, R == 1) ---------------
    N, C, H, W = 2, 4, 16, 16
    logits = jax.random.normal(k1, (N, C, H, W), dtype=jnp.float32)
    inputs = jax.nn.softmax(logits, axis=1)          # "probabilities"
    labels = jax.random.randint(k2, (N, H, W), 0, C)
    target = jax.nn.one_hot(labels, C, axis=1, dtype=jnp.float32)   # (N, C, H, W)

    loss = jax.block_until_ready(multiclass_dice_loss(inputs, target))
    ref = _reference(inputs, target)
    assert jnp.allclose(loss, ref, rtol=1e-5, atol=1e-5), (loss, ref)

    weights = jax.random.uniform(k3, (C,), dtype=jnp.float32)
    loss_w = jax.block_until_ready(multiclass_dice_loss(inputs, target, weights))
    ref_w = _reference(inputs, target, weights)
    assert jnp.allclose(loss_w, ref_w, rtol=1e-5, atol=1e-5), (loss_w, ref_w)

    # --- Test 2: exercises R >= 2 (megacore split), multi-step HW reduction and
    #             the ragged-tail masked last step, by forcing tiny blocks -------
    N2, C2, H2, W2 = 4, 4, 20, 20                     # NC = 16 -> BR = 8, R = 2
    logits2 = jax.random.normal(k4, (N2, C2, H2, W2), dtype=jnp.float32)
    inputs2 = jax.nn.softmax(logits2, axis=1)
    labels2 = jax.random.randint(k5, (N2, H2, W2), 0, C2)
    target2 = jax.nn.one_hot(labels2, C2, axis=1, dtype=jnp.float32)

    loss2 = jax.block_until_ready(
        multiclass_dice_loss(inputs2, target2, weights, max_block_bytes=4096))
    ref2 = _reference(inputs2, target2, weights)
    assert jnp.allclose(loss2, ref2, rtol=1e-5, atol=1e-5), (loss2, ref2)

    # --- Test 3: bf16 inputs stream natively (half HBM bytes), f32 math in-kernel
    inputs3 = inputs.astype(jnp.bfloat16)
    target3 = target.astype(jnp.bfloat16)
    loss3 = jax.block_until_ready(multiclass_dice_loss(inputs3, target3))
    ref3 = _reference(inputs3, target3)
    assert jnp.allclose(loss3, ref3, rtol=1e-4, atol=1e-4), (loss3, ref3)

    print("KERNEL_OK")
</pallas_src>

<mosaic_0001>
module attributes {stable_mosaic.version = 11 : i64} {
  func.func @_dice_partial_kernel(%arg0: i32, %arg1: i32, %arg2: memref<8x1xf32, #tpu.memory_space<vmem>>, %arg3: memref<8x256xf32, #tpu.memory_space<vmem>>, %arg4: memref<8x256xf32, #tpu.memory_space<vmem>>, %arg5: memref<1x1x1xf32, #tpu.memory_space<vmem>>, %arg6: memref<8x1xf32, #tpu.memory_space<vmem>>, %arg7: memref<8x1xf32, #tpu.memory_space<vmem>>) attributes {dimension_semantics = [#tpu.dimension_semantics<parallel>, #tpu.dimension_semantics<arbitrary>], iteration_bounds = array<i64: 1, 1>, scalar_prefetch = 0 : i64, scratch_operands = 2 : i64, tpu.core_type = #tpu.core_type<tc>, window_params = [{transform_indices = @transform_0, window_bounds = array<i64: 8, 1>}, {transform_indices = @transform_1, window_bounds = array<i64: 8, 256>}, {transform_indices = @transform_2, window_bounds = array<i64: 8, 256>}, {transform_indices = @transform_3, window_bounds = array<i64: 1, 1, 1>}]} {
    %c0_i32 = arith.constant 0 : i32
    %0 = arith.cmpi eq, %arg1, %c0_i32 : i32
    %1 = arith.extui %0 : i1 to i32
    %c0_i32_0 = arith.constant 0 : i32
    %2 = arith.cmpi ne, %1, %c0_i32_0 : i32
    scf.if %2 {
      %cst_15 = arith.constant 0.000000e+00 : f32
      %20 = vector.broadcast %cst_15 : f32 to vector<8x1xf32>
      %c0_16 = arith.constant 0 : index
      %c0_17 = arith.constant 0 : index
      %21 = vector.load %arg6[%c0_16, %c0_17] : memref<8x1xf32, #tpu.memory_space<vmem>>, vector<8x1xf32>
      tpu.vector_store %arg6[%c0_16, %c0_17], %20 {strides = array<i32>} : memref<8x1xf32, #tpu.memory_space<vmem>>, vector<8x1xf32>,
      %cst_18 = arith.constant 0.000000e+00 : f32
      %22 = vector.broadcast %cst_18 : f32 to vector<8x1xf32>
      %c0_19 = arith.constant 0 : index
      %c0_20 = arith.constant 0 : index
      %23 = vector.load %arg7[%c0_19, %c0_20] : memref<8x1xf32, #tpu.memory_space<vmem>>, vector<8x1xf32>
      tpu.vector_store %arg7[%c0_19, %c0_20], %22 {strides = array<i32>} : memref<8x1xf32, #tpu.memory_space<vmem>>, vector<8x1xf32>,
    } else {
    }
    %c0 = arith.constant 0 : index
    %c0_1 = arith.constant 0 : index
    %3 = vector.load %arg3[%c0, %c0_1] : memref<8x256xf32, #tpu.memory_space<vmem>>, vector<8x256xf32>
    %c0_2 = arith.constant 0 : index
    %c0_3 = arith.constant 0 : index
    %4 = vector.load %arg4[%c0_2, %c0_3] : memref<8x256xf32, #tpu.memory_space<vmem>>, vector<8x256xf32>
    %c0_4 = arith.constant 0 : index
    %c0_5 = arith.constant 0 : index
    %5 = vector.load %arg6[%c0_4, %c0_5] : memref<8x1xf32, #tpu.memory_space<vmem>>, vector<8x1xf32>
    %6 = arith.mulf %3, %4 : vector<8x256xf32>
    %cst = arith.constant dense<0.000000e+00> : vector<8xf32>
    %7 = vector.multi_reduction <add>, %6, %cst [1] : vector<8x256xf32> to vector<8xf32>
    %8 = vector.shape_cast %7 : vector<8xf32> to vector<8x1xf32>
    %9 = arith.addf %5, %8 : vector<8x1xf32>
    %c0_6 = arith.constant 0 : index
    %c0_7 = arith.constant 0 : index
    %10 = vector.load %arg6[%c0_6, %c0_7] : memref<8x1xf32, #tpu.memory_space<vmem>>, vector<8x1xf32>
    tpu.vector_store %arg6[%c0_6, %c0_7], %9 {strides = array<i32>} : memref<8x1xf32, #tpu.memory_space<vmem>>, vector<8x1xf32>,
    %c0_8 = arith.constant 0 : index
    %c0_9 = arith.constant 0 : index
    %11 = vector.load %arg7[%c0_8, %c0_9] : memref<8x1xf32, #tpu.memory_space<vmem>>, vector<8x1xf32>
    %12 = arith.addf %3, %4 : vector<8x256xf32>
    %cst_10 = arith.constant dense<0.000000e+00> : vector<8xf32>
    %13 = vector.multi_reduction <add>, %12, %cst_10 [1] : vector<8x256xf32> to vector<8xf32>
    %14 = vector.shape_cast %13 : vector<8xf32> to vector<8x1xf32>
    %15 = arith.addf %11, %14 : vector<8x1xf32>
    %c0_11 = arith.constant 0 : index
    %c0_12 = arith.constant 0 : index
    %16 = vector.load %arg7[%c0_11, %c0_12] : memref<8x1xf32, #tpu.memory_space<vmem>>, vector<8x1xf32>
    tpu.vector_store %arg7[%c0_11, %c0_12], %15 {strides = array<i32>} : memref<8x1xf32, #tpu.memory_space<vmem>>, vector<8x1xf32>,
    %c0_i32_13 = arith.constant 0 : i32
    %17 = arith.cmpi eq, %arg1, %c0_i32_13 : i32
    %18 = arith.extui %17 : i1 to i32
    %c0_i32_14 = arith.constant 0 : i32
    %19 = arith.cmpi ne, %18, %c0_i32_14 : i32
    scf.if %19 {
      %c0_15 = arith.constant 0 : index
      %c0_16 = arith.constant 0 : index
      %20 = vector.load %arg6[%c0_15, %c0_16] : memref<8x1xf32, #tpu.memory_space<vmem>>, vector<8x1xf32>
      %cst_17 = arith.constant 1.000000e+00 : f32
      %21 = vector.broadcast %cst_17 : f32 to vector<8x1xf32>
      %22 = arith.addf %20, %21 : vector<8x1xf32>
      %cst_18 = arith.constant 2.000000e+00 : f32
      %23 = vector.broadcast %cst_18 : f32 to vector<8x1xf32>
      %24 = arith.mulf %23, %22 : vector<8x1xf32>
      %c0_19 = arith.constant 0 : index
      %c0_20 = arith.constant 0 : index
      %25 = vector.load %arg7[%c0_19, %c0_20] : memref<8x1xf32, #tpu.memory_space<vmem>>, vector<8x1xf32>
      %cst_21 = arith.constant 1.000000e+00 : f32
      %26 = vector.broadcast %cst_21 : f32 to vector<8x1xf32>
      %27 = arith.addf %25, %26 : vector<8x1xf32>
      %28 = arith.divf %24, %27 : vector<8x1xf32>
      %c0_22 = arith.constant 0 : index
      %c0_23 = arith.constant 0 : index
      %29 = vector.load %arg2[%c0_22, %c0_23] : memref<8x1xf32, #tpu.memory_space<vmem>>, vector<8x1xf32>
      %cst_24 = arith.constant 1.000000e+00 : f32
      %30 = vector.broadcast %cst_24 : f32 to vector<8x1xf32>
      %31 = arith.subf %30, %28 : vector<8x1xf32>
      %32 = arith.mulf %29, %31 : vector<8x1xf32>
      %33 = vector.shape_cast %32 : vector<8x1xf32> to vector<1x8x1xf32>
      %cst_25 = arith.constant dense<0.000000e+00> : vector<1xf32>
      %34 = vector.multi_reduction <add>, %33, %cst_25 [1, 2] : vector<1x8x1xf32> to vector<1xf32>
      %35 = vector.shape_cast %34 : vector<1xf32> to vector<1x1x1xf32>
      %36 = vector.extract %35[0, 0, 0] : f32 from vector<1x1x1xf32>
      %37 = vector.broadcast %36 : f32 to vector<1x1x1xf32>
      %c0_26 = arith.constant 0 : index
      %c0_27 = arith.constant 0 : index
      %c0_28 = arith.constant 0 : index
      %38 = vector.load %arg5[%c0_26, %c0_27, %c0_28] : memref<1x1x1xf32, #tpu.memory_space<vmem>>, vector<1x1x1xf32>
      tpu.vector_store %arg5[%c0_26, %c0_27, %c0_28], %37 {strides = array<i32>} : memref<1x1x1xf32, #tpu.memory_space<vmem>>, vector<1x1x1xf32>,
    } else {
    }
    return
  }
  func.func @transform_0(%arg0: i32, %arg1: i32) -> (i32, i32) {
    %c0_i32 = arith.constant 0 : i32
    %c0_i32_0 = arith.constant 0 : i32
    return %arg0, %c0_i32 : i32, i32
  }
  func.func @transform_1(%arg0: i32, %arg1: i32) -> (i32, i32) {
    %c0_i32 = arith.constant 0 : i32
    return %arg0, %arg1 : i32, i32
  }
  func.func @transform_2(%arg0: i32, %arg1: i32) -> (i32, i32) {
    %c0_i32 = arith.constant 0 : i32
    return %arg0, %arg1 : i32, i32
  }
  func.func @transform_3(%arg0: i32, %arg1: i32) -> (i32, i32, i32) {
    %c0_i32 = arith.constant 0 : i32
    %c0_i32_0 = arith.constant 0 : i32
    %c0_i32_1 = arith.constant 0 : i32
    return %arg0, %c0_i32, %c0_i32_0 : i32, i32, i32
  }
}

</mosaic_0001>

<bundles_post_ra>
// kernel: tpu_custom_call.1
= control target key start
LH: loop header
LB: loop body
LE: loop exit
PB: predicated region body
PF: predicated region fallthrough
CT: control target
= control target key end

     0   :  { %8 = vsyncpa [#allocation5], 0  ;;  %s212_s0 = inlined_call_operand.vmem [shape: f32[8,1], index: 0, kind: input, shape index: {}]   ;;  %s213_s1 = inlined_call_operand.hbm [shape: f32[8,256], index: 1, kind: input, shape index: {}]   ;;  %s214_s2 = inlined_call_operand.vmem [shape: f32[8,256], index: 2, kind: input, shape index: {}]   ;;  %s215_s3 = inlined_call_operand.hbm [shape: f32[1,1,1], index: 3, kind: output, shape index: {}]  }
   0x1   :  { %9 = vsyncpa [#allocation6], 0  ;;  %s151_s12 = smov [#allocation4]   ;;  %s103_s16 = scalar_lea.hbm %s213_s1, 256 }
   0x2   :  { %s18_s13 = sshll.u32 %s151_s12, 4  ;;  %p104_p0 = scmp.ne.s32.totalorder %s213_s1, %s103_s16  ;;  %s19_s13 = int_to_ptr.vmem [resolvable:$true] %s18_s13 }
   0x3   :  { %p107_p1 = scmp.lt.u32.totalorder %s103_s16, %s213_s1 }
   0x5   :  { %p109_p2 = pnand %p107_p1, %p104_p0 }
   0x7   :  { %112 = shalt.err (!%p109_p2)
}
   0x8   :  { %s113_s21 = scalar_lea.vmem %s19_s13, 256  ;;  %p118_p4 = scmp.lt.s32.totalorder %s19_s13, %s19_s13 }
   0x9   :  { %p114_p3 = scmp.ne.s32.totalorder %s19_s13, %s113_s21  ;;  %p119_p5 = scmp.lt.s32.totalorder %s113_s21, %s113_s21 }
   0xb   :  { %p120_p6 = por %p119_p5, %p118_p4 }
   0xd   :  { %p121_p7 = pnand %p120_p6, %p114_p3 }
   0xf   :  { %124 = shalt.err (!%p121_p7)
}
  0x10   :  { %21 = dma.hbm_to_vmem [thread:$0]  %s213_s1, 256, %s19_s13, [#allocation5]  }
  0x11   :  { %147 = dma.done.wait [#allocation5], 256  }
  0x12   :  { %148 = vsyncadd [#allocation5], 4294967040  ;;  %vm31_vm0 = vcmask 7168   ;;  %v152_v0 = vmov 0.0   ;;  %v34_v1 = vld [vmem:[#allocation4] sm:$0xff]  ;;  %v35_v2 = vld [vmem:[#allocation4 + $0x8] sm:$0xff] }
  0x13   :  { %33 = vst.msk [vmem:[#allocation3] sm:$0xff] %vm31_vm0, %v152_v0  ;;  %32 = vst.msk [vmem:[#allocation2] sm:$0xff] %vm31_vm0, %v152_v0  ;;  %v36_v3 = vld [vmem:[%s214_s2] sm:$0xff]  ;;  %v37_v4 = vld [vmem:[%s214_s2 + $0x8] sm:$0xff]  ;;  %s153_s28 = smov [#allocation7]   ;;  %vm79_vm1 = vcmask 0  }
  0x14   :  { %v48_v5 = vadd.f32 %v36_v3, %v34_v1  ;;  %v49_v6 = vadd.f32 %v37_v4, %v35_v2  ;;  %v39_v7 = vmul.f32 %v36_v3, %v34_v1  ;;  %v40_v8 = vmul.f32 %v37_v4, %v35_v2  ;;  %v65_v24 = vld [vmem:[%s212_s0] sm:$0xff]  ;;  %s87_s29 = sshll.u32 %s153_s28, 4  ;;  %s88_s29 = int_to_ptr.vmem [resolvable:$true] %s87_s29 }
  0x15   :  { %s125_s0 = scalar_lea.vmem %s88_s29, 16  ;;  %s129_s4 = scalar_lea.vmem %s88_s29, 32 }
  0x16   :  { %v50_v9 = vadd.f32 %v49_v6, %v48_v5  ;;  %v41_v10 = vadd.f32 %v40_v8, %v39_v7  ;;  %p126_p8 = scmp.ne.s32.totalorder %s88_s29, %s125_s0  ;;  %p130_p9 = scmp.lt.s32.totalorder %s88_s29, %s88_s29 }
  0x17   :  { %p131_p10 = scmp.lt.s32.totalorder %s129_s4, %s125_s0 }
  0x18   :  { %51 = vadd.xlane.f32.xlu0 %v50_v9 }
  0x19   :  { %p132_p11 = por %p131_p10, %p130_p9 }
  0x1a   :  { %v47_v11 = vld [vmem:[#allocation3] sm:$0xff]  ;;  %v38_v14 = vld [vmem:[#allocation2] sm:$0xff] }
  0x1b   :  { %p133_p12 = pnand %p132_p11, %p126_p8 }
  0x1c   :  { %42 = vadd.xlane.f32.xlu0 %v41_v10 }
  0xa5   :  { %v52_v12 = vpop.xlane.xlu0 %51 }
  0xa6   :  { %v53_v13 = vadd.f32 %v52_v12, %v47_v11 }
  0xa8   :  { %54 = vst.msk [vmem:[#allocation3] sm:$0xff] %vm31_vm0, %v53_v13 }
  0xa9   :  { %v43_v15 = vpop.xlane.xlu0 %42 }
  0xaa   :  { %v44_v16 = vadd.f32 %v43_v15, %v38_v14 }
  0xac   :  { %46 = vst.msk [vmem:[#allocation2] sm:$0xff] %vm31_vm0, %v44_v16 }
  0xaf   :  { %v61_v17 = vld [vmem:[#allocation3] sm:$0xff] }
  0xb0   :  { %v62_v18 = vadd.f32 1.0, %v61_v17 }
  0xb2   :  { %101 = vrcp.f32 %v62_v18 }
  0xb3   :  { %v58_v19 = vld [vmem:[#allocation2] sm:$0xff] }
  0xb4   :  { %v59_v20 = vadd.f32 1.0, %v58_v19 }
  0xb6   :  { %v60_v21 = vmul.f32 2.0, %v59_v20 }
  0xbc   :  { %v102_v22 = vpop.eup %101 }
  0xbd   :  { %v64_v23 = vmul.f32 %v102_v22, %v60_v21 }
  0xbf   :  { %v66_v25 = vsub.f32 1.0, %v64_v23 }
  0xc1   :  { %v67_v26 = vmul.f32 %v66_v25, %v65_v24 }
  0xc3   :  { %v68_v27 = vsel %vm31_vm0, %v67_v26, 0.0 }
  0xc4   :  { %69 = vadd.xlane.f32.xlu1 %v68_v27 }
 0x151   :  { %v70_v28 = vpop.xlane.xlu1 %69 }
 0x152   :  { %v71_v29 = vrot.slane %v70_v28, 4 }
 0x154   :  { %v72_v30 = vadd.f32 %v71_v29, %v70_v28 }
 0x156   :  { %v73_v31 = vrot.slane %v72_v30, 2 }
 0x158   :  { %v74_v32 = vadd.f32 %v73_v31, %v72_v30 }
 0x15a   :  { %v75_v33 = vrot.slane %v74_v32, 1 }
 0x15c   :  { %v76_v34 = vadd.f32 %v75_v33, %v74_v32 }
 0x15e   :  { %96 = vpush %v76_v34 }
 0x18f   :  { %s97_s30 = spop %96 }
 0x190   :  { %v78_v35 = vstv %s97_s30 }
 0x191   :  { %80 = vst.msk [vmem:[#allocation7] sm:$0x1] %vm79_vm1, %v78_v35 }
 0x192   :  { %136 = shalt.err (!%p133_p12)
}
 0x193   :  { %s137_s7 = scalar_lea.hbm %s215_s3, 16 }
 0x194   :  { %p138_p13 = scmp.ne.s32.totalorder %s215_s3, %s137_s7  ;;  %p141_p0 = scmp.lt.u32.totalorder %s137_s7, %s215_s3 }
 0x196   :  { %p143_p1 = pnand %p141_p0, %p138_p13 }
 0x198   :  { %146 = shalt.err (!%p143_p1)
}
 0x199   :  { %90 = dma.vmem_to_hbm [thread:$0]  %s88_s29, 16, %s215_s3, [#allocation6]  }
 0x19a   :  { %149 = dma.done.wait [#allocation6], 16  }
 0x19b   :  { %150 = vsyncadd [#allocation6], 4294967280 }
 0x19c   :  { %94 = vsyncpa [#allocation5], 1 }
 0x19d   :  { %95 = vsyncpa [#allocation6], 1 }

</bundles_post_ra>
